<compile_context>
chip_gen: v7x
topology: tpu7x:2x2x1
jax: 0.10.0
libtpu: 0.0.40
codegen_flags: <defaults>
</compile_context>

<pallas_src>
import jax
import jax.numpy as jnp
from jax.experimental import pallas as pl
from jax.experimental.pallas import tpu as pltpu


def _round_up(n: int, m: int) -> int:
    return ((n + m - 1) // m) * m


def _encoder_kernel(x_ref, w_ref, b_ref, eps_ref, z_ref, mu_ref):
    # x_ref:   (tm, F)   flattened input tile
    # w_ref:   (Zp, F)   linear weight (native layout), VMEM-resident across tiles
    # b_ref:   (1, Zp)   linear bias (zero in padded lanes)
    # eps_ref: (tm, Zp)  standard-normal noise (reparameterization)
    # outputs: z, mu     (tm, Zp)
    x = x_ref[...]
    w = w_ref[...]

    # mu = x @ W^T + b : contract x dim 1 with w dim 1 (trans_b) on the MXU,
    # f32 accumulation. Bias broadcast over the sublane (batch) axis.
    mu = jax.lax.dot_general(
        x, w,
        dimension_numbers=(((1,), (1,)), ((), ())),
        preferred_element_type=jnp.float32,
    ) + b_ref[...]

    mu_ref[...] = mu.astype(mu_ref.dtype)
    # std == exp(0.5 * 0) == 1 exactly, so z = mu + eps (no exp, no multiply).
    z_ref[...] = (mu + eps_ref[...]).astype(z_ref.dtype)


@jax.jit
def encoder_forward(x, weight, bias, eps):
    """x: (B, c_dim, x_dim) f32; weight: (Z, F); bias: (Z,); eps: (B, Z).

    Returns (z, mu, logvar), each (B, Z) f32, matching Encoder.forward.
    """
    B = x.shape[0]
    Z, F = weight.shape

    xflat = x.reshape(B, F)                       # == torch .view(B, -1), row-major

    # Lane-dense output width (multiple of 128) and sublane-dense batch tiles.
    Zp = _round_up(Z, 128)
    tm = 512 if B >= 512 else _round_up(B, 8)     # big tiles amortize per-step overhead
    Bp = _round_up(B, tm)

    # Zero-pad. Padded weight rows / bias lanes are zero, so padded output
    # lanes are exactly zero and are sliced away below — no leakage.
    if Bp != B:
        xflat = jnp.pad(xflat, ((0, Bp - B), (0, 0)))
    eps_p = jnp.pad(eps, ((0, Bp - B), (0, Zp - Z))) if (Bp != B or Zp != Z) else eps
    w_p = jnp.pad(weight, ((0, Zp - Z), (0, 0))) if Zp != Z else weight
    b_p = jnp.pad(bias, (0, Zp - Z)).reshape(1, Zp)

    grid = (Bp // tm,)

    z_p, mu_p = pl.pallas_call(
        _encoder_kernel,
        out_shape=(
            jax.ShapeDtypeStruct((Bp, Zp), jnp.float32),  # z
            jax.ShapeDtypeStruct((Bp, Zp), jnp.float32),  # mu
        ),
        grid=grid,
        in_specs=[
            pl.BlockSpec((tm, F), lambda i: (i, 0)),     # x tile (F = full extent)
            pl.BlockSpec((Zp, F), lambda i: (0, 0)),     # weight, resident
            pl.BlockSpec((1, Zp), lambda i: (0, 0)),     # bias, resident
            pl.BlockSpec((tm, Zp), lambda i: (i, 0)),    # eps tile
        ],
        out_specs=(
            pl.BlockSpec((tm, Zp), lambda i: (i, 0)),    # z tile
            pl.BlockSpec((tm, Zp), lambda i: (i, 0)),    # mu tile
        ),
        compiler_params=pltpu.CompilerParams(
            dimension_semantics=("parallel",),           # batch tiles are independent
        ),
    )(xflat, w_p, b_p, eps_p)

    z = z_p[:B, :Z]
    mu = mu_p[:B, :Z]
    logvar = jnp.zeros((B, Z), jnp.float32)       # constant; never written by the kernel
    return z, mu, logvar


if __name__ == "__main__":
    # Small shapes consistent with the module: x_dim=16, c_dim=4, z_dim=32, batch=2
    B, c_dim, x_dim, z_dim = 2, 4, 16, 32
    F = c_dim * x_dim

    key = jax.random.PRNGKey(0)
    kx, kw, kb, keps = jax.random.split(key, 4)

    # Deterministic parameter init (uniform like torch Linear default range).
    bound = 1.0 / jnp.sqrt(F)
    weight = jax.random.uniform(kw, (z_dim, F), jnp.float32, -bound, bound)
    bias = jax.random.uniform(kb, (z_dim,), jnp.float32, -bound, bound)

    x = jax.random.normal(kx, (B, c_dim, x_dim), jnp.float32)
    eps = jax.random.normal(keps, (B, z_dim), jnp.float32)  # reparameterization noise

    z, mu, logvar = encoder_forward(x, weight, bias, eps)
    jax.block_until_ready((z, mu, logvar))

    # Reference check in plain JAX
    mu_ref = x.reshape(B, -1) @ weight.T + bias
    z_ref = mu_ref + eps  # std == 1 since logvar == 0
    assert mu.shape == (B, z_dim) and z.shape == (B, z_dim) and logvar.shape == (B, z_dim)
    assert jnp.allclose(mu, mu_ref, atol=1e-5, rtol=1e-5)
    assert jnp.allclose(z, z_ref, atol=1e-5, rtol=1e-5)
    assert jnp.all(logvar == 0.0)

    print("KERNEL_OK")
</pallas_src>

<mosaic_0001>
module attributes {stable_mosaic.version = 11 : i64} {
  func.func @_encoder_kernel(%arg0: i32, %arg1: memref<8x64xf32, #tpu.memory_space<vmem>>, %arg2: memref<128x64xf32, #tpu.memory_space<vmem>>, %arg3: memref<1x128xf32, #tpu.memory_space<vmem>>, %arg4: memref<8x128xf32, #tpu.memory_space<vmem>>, %arg5: memref<8x128xf32, #tpu.memory_space<vmem>>, %arg6: memref<8x128xf32, #tpu.memory_space<vmem>>) attributes {dimension_semantics = [#tpu.dimension_semantics<parallel>], iteration_bounds = array<i64: 1>, scalar_prefetch = 0 : i64, scratch_operands = 0 : i64, tpu.core_type = #tpu.core_type<tc>, window_params = [{transform_indices = @transform_0, window_bounds = array<i64: 8, 64>}, {pipeline_mode = #tpu.pipeline_mode<synchronous>, transform_indices = @transform_1, window_bounds = array<i64: 128, 64>}, {pipeline_mode = #tpu.pipeline_mode<synchronous>, transform_indices = @transform_2, window_bounds = array<i64: 1, 128>}, {transform_indices = @transform_3, window_bounds = array<i64: 8, 128>}, {transform_indices = @transform_4, window_bounds = array<i64: 8, 128>}, {transform_indices = @transform_5, window_bounds = array<i64: 8, 128>}]} {
    %c0 = arith.constant 0 : index
    %c0_0 = arith.constant 0 : index
    %0 = vector.load %arg1[%c0, %c0_0] : memref<8x64xf32, #tpu.memory_space<vmem>>, vector<8x64xf32>
    %c0_1 = arith.constant 0 : index
    %c0_2 = arith.constant 0 : index
    %1 = vector.load %arg2[%c0_1, %c0_2] : memref<128x64xf32, #tpu.memory_space<vmem>>, vector<128x64xf32>
    %cst = arith.constant dense<0.000000e+00> : vector<8x128xf32>
    %2 = tpu.matmul %0, %1, %cst {dimension_numbers = #tpu.dot_dimension_numbers<[1], [1], [0], [0], [0, 0, 1, 0], [], []>} : vector<8x64xf32>, vector<128x64xf32>, vector<8x128xf32> -> vector<8x128xf32>
    %c0_3 = arith.constant 0 : index
    %c0_4 = arith.constant 0 : index
    %3 = vector.load %arg3[%c0_3, %c0_4] : memref<1x128xf32, #tpu.memory_space<vmem>>, vector<1x128xf32>
    %4 = vector.broadcast %3 : vector<1x128xf32> to vector<8x128xf32>
    %5 = arith.addf %2, %4 : vector<8x128xf32>
    %c0_5 = arith.constant 0 : index
    %c0_6 = arith.constant 0 : index
    %6 = vector.load %arg6[%c0_5, %c0_6] : memref<8x128xf32, #tpu.memory_space<vmem>>, vector<8x128xf32>
    tpu.vector_store %arg6[%c0_5, %c0_6], %5 {strides = array<i32>} : memref<8x128xf32, #tpu.memory_space<vmem>>, vector<8x128xf32>,
    %c0_7 = arith.constant 0 : index
    %c0_8 = arith.constant 0 : index
    %7 = vector.load %arg4[%c0_7, %c0_8] : memref<8x128xf32, #tpu.memory_space<vmem>>, vector<8x128xf32>
    %8 = arith.addf %5, %7 : vector<8x128xf32>
    %c0_9 = arith.constant 0 : index
    %c0_10 = arith.constant 0 : index
    %9 = vector.load %arg5[%c0_9, %c0_10] : memref<8x128xf32, #tpu.memory_space<vmem>>, vector<8x128xf32>
    tpu.vector_store %arg5[%c0_9, %c0_10], %8 {strides = array<i32>} : memref<8x128xf32, #tpu.memory_space<vmem>>, vector<8x128xf32>,
    return
  }
  func.func @transform_0(%arg0: i32) -> (i32, i32) {
    %c0_i32 = arith.constant 0 : i32
    %c0_i32_0 = arith.constant 0 : i32
    return %arg0, %c0_i32 : i32, i32
  }
  func.func @transform_1(%arg0: i32) -> (i32, i32) {
    %c0_i32 = arith.constant 0 : i32
    %c0_i32_0 = arith.constant 0 : i32
    %c0_i32_1 = arith.constant 0 : i32
    return %c0_i32, %c0_i32_0 : i32, i32
  }
  func.func @transform_2(%arg0: i32) -> (i32, i32) {
    %c0_i32 = arith.constant 0 : i32
    %c0_i32_0 = arith.constant 0 : i32
    %c0_i32_1 = arith.constant 0 : i32
    return %c0_i32, %c0_i32_0 : i32, i32
  }
  func.func @transform_3(%arg0: i32) -> (i32, i32) {
    %c0_i32 = arith.constant 0 : i32
    %c0_i32_0 = arith.constant 0 : i32
    return %arg0, %c0_i32 : i32, i32
  }
  func.func @transform_4(%arg0: i32) -> (i32, i32) {
    %c0_i32 = arith.constant 0 : i32
    %c0_i32_0 = arith.constant 0 : i32
    return %arg0, %c0_i32 : i32, i32
  }
  func.func @transform_5(%arg0: i32) -> (i32, i32) {
    %c0_i32 = arith.constant 0 : i32
    %c0_i32_0 = arith.constant 0 : i32
    return %arg0, %c0_i32 : i32, i32
  }
}

</mosaic_0001>

<bundles_post_ra>
// kernel: encoder_forward.1
= control target key start
LH: loop header
LB: loop body
LE: loop exit
PB: predicated region body
PF: predicated region fallthrough
CT: control target
= control target key end

     0   :  { %vm43_vm0 = vcmask 523264   ;;  %v282_v0 = vmov 0.0|0.0   ;;  %vm283_vm2 = vmmov 0   ;;  %v284_v4 = vmov 0.0   ;;  %s401_s1 = inlined_call_operand.vmem [shape: f32[128,64], index: 1, kind: input, shape index: {}]   ;;  %s402_s0 = inlined_call_operand.vmem [shape: f32[8,64], index: 0, kind: input, shape index: {}]   ;;  %s403_s2 = inlined_call_operand.vmem [shape: f32[1,128], index: 2, kind: input, shape index: {}]   ;;  %s404_s3 = inlined_call_operand.vmem [shape: f32[8,128], index: 3, kind: input, shape index: {}]   ;;  %s405_s5 = inlined_call_operand.vmem [shape: f32[8,128], index: 5, kind: output, shape index: {1}]   ;;  %s406_s4 = inlined_call_operand.vmem [shape: f32[8,128], index: 4, kind: output, shape index: {0}]  }
   0x1   :  { %247 = vmatprep.subr.bf16.mxu0 %v282_v0  ;;  %v20_v1 = vld [vmem:[%s401_s1] sm:$0xff]  ;;  %v21_v2 = vld [vmem:[%s401_s1 + $0x8] sm:$0xff]  ;;  %vm323_vm1 = vmpackc.low %vm43_vm0, %vm43_vm0  ;;  %244 = vmatprep.mubr.msk.f32.mxu0 %vm283_vm2, %v284_v4 }
   0x2   :  { %v248_v5 = vpack.c.bf16 %v21_v2, %v20_v1  ;;  %v22_v6 = vld [vmem:[%s401_s1 + $0x10] sm:$0xff]  ;;  %v23_v7 = vld [vmem:[%s401_s1 + $0x18] sm:$0xff]  ;;  %v24_v9 = vld [vmem:[%s401_s1 + $0x20] sm:$0xff] }
   0x3   :  { %v252_v8 = vpack.c.bf16 %v23_v7, %v22_v6  ;;  %v25_v10 = vld [vmem:[%s401_s1 + $0x28] sm:$0xff]  ;;  %v26_v12 = vld [vmem:[%s401_s1 + $0x30] sm:$0xff]  ;;  %v27_v13 = vld [vmem:[%s401_s1 + $0x38] sm:$0xff] }
   0x4   :  { %250 = vmatpush3.bf16.xpose.msk.msra.mxu0 %vm323_vm1, %v248_v5  ;;  %v256_v11 = vpack.c.bf16 %v25_v10, %v24_v9  ;;  %v260_v14 = vpack.c.bf16 %v27_v13, %v26_v12  ;;  %v28_v15 = vld [vmem:[%s401_s1 + $0x40] sm:$0xff]  ;;  %v29_v16 = vld [vmem:[%s401_s1 + $0x48] sm:$0xff]  ;;  %v30_v18 = vld [vmem:[%s401_s1 + $0x50] sm:$0xff] }
   0x5   :  { %251 = vmatprep.subr.bf16.mxu0 %v282_v0  ;;  %v264_v17 = vpack.c.bf16 %v29_v16, %v28_v15  ;;  %v31_v19 = vld [vmem:[%s401_s1 + $0x58] sm:$0xff]  ;;  %v32_v21 = vld [vmem:[%s401_s1 + $0x60] sm:$0xff]  ;;  %v33_v22 = vld [vmem:[%s401_s1 + $0x68] sm:$0xff] }
   0x6   :  { %v268_v20 = vpack.c.bf16 %v31_v19, %v30_v18  ;;  %v272_v23 = vpack.c.bf16 %v33_v22, %v32_v21  ;;  %v34_v24 = vld [vmem:[%s401_s1 + $0x70] sm:$0xff]  ;;  %v35_v25 = vld [vmem:[%s401_s1 + $0x78] sm:$0xff]  ;;  %v19_v27 = vld [vmem:[%s402_s0] sm:$0xff] }
   0x7   :  { %v276_v26 = vpack.c.bf16 %v35_v25, %v34_v24  ;;  %v177_v28 = vld [vmem:[%s403_s2] ss:$0 sm:$0xff] }
   0x8   :  { %v166_v30 = vld [vmem:[%s404_s3] sm:$0xff] }
   0xc   :  { %254 = vmatpush3.bf16.xpose.msk.msra.mxu0 %vm323_vm1, %v252_v8 }
   0xd   :  { %255 = vmatprep.subr.bf16.mxu0 %v282_v0 }
  0x14   :  { %258 = vmatpush3.bf16.xpose.msk.msra.mxu0 %vm323_vm1, %v256_v11 }
  0x15   :  { %259 = vmatprep.subr.bf16.mxu0 %v282_v0 }
  0x1c   :  { %262 = vmatpush3.bf16.xpose.msk.msra.mxu0 %vm323_vm1, %v260_v14 }
  0x1d   :  { %263 = vmatprep.subr.bf16.mxu0 %v282_v0 }
  0x24   :  { %266 = vmatpush3.bf16.xpose.msk.msra.mxu0 %vm323_vm1, %v264_v17 }
  0x25   :  { %267 = vmatprep.subr.bf16.mxu0 %v282_v0 }
  0x2c   :  { %270 = vmatpush3.bf16.xpose.msk.msra.mxu0 %vm323_vm1, %v268_v20 }
  0x2d   :  { %271 = vmatprep.subr.bf16.mxu0 %v282_v0 }
  0x34   :  { %274 = vmatpush3.bf16.xpose.msk.msra.mxu0 %vm323_vm1, %v272_v23 }
  0x35   :  { %275 = vmatprep.subr.bf16.mxu0 %v282_v0 }
  0x3c   :  { %278 = vmatpush3.bf16.xpose.msk.msra.mxu0 %vm323_vm1, %v276_v26 }
  0x43   :  { %245 = vmatmul.mubr.msk.f32.vlgmr.msra.gmra.mrb[0].mxu0 %vm43_vm0, %v19_v27 }
 0x116   :  { %v161_v29 = vpop.f32.mrb[0].mxu0 }
 0x117   :  { %v162_v31 = vadd.f32 %v177_v28, %v161_v29  ;;  %v246_v32 = vpop.f32.mrb[1].mxu0 }
 0x119   :  { %165 = vst [vmem:[%s405_s5] sm:$0xff] %v162_v31  ;;  %v167_v33 = vadd.f32 %v166_v30, %v162_v31 }
 0x11b   :  { %168 = vst [vmem:[%s406_s4] sm:$0xff] %v167_v33 }

</bundles_post_ra>
